<compile_context>
chip_gen: v5e
topology: v5e:2x2
jax: 0.10.0
libtpu: 0.0.40
codegen_flags: <defaults>
</compile_context>

<pallas_src>
import functools

import jax
import jax.numpy as jnp
from jax.experimental import pallas as pl
from jax.experimental.pallas import tpu as pltpu


def _round_up(x, m):
    return (x + m - 1) // m * m


def _cdiv(a, b):
    return (a + b - 1) // b


def _mlp_kernel(x_ref, w1_ref, w2_ref, b2_ref, o_ref, *, mxu_dtype):
    # x_ref : (TB, Dp)   -- columns are [x, t, 1, 0...]; t-row and b1 live in w1
    # w1_ref: (Dp, H1p)  -- pre-cast to mxu_dtype
    # w2_ref: (H1p, Op)  -- pre-cast to mxu_dtype
    # b2_ref: (1, Op)    -- float32
    # o_ref : (TB, Op)
    x = x_ref[...].astype(mxu_dtype)
    h = jnp.dot(x, w1_ref[...], preferred_element_type=jnp.float32)   # MXU
    h = jnp.tanh(h)                                                    # EUP
    o = jnp.dot(h.astype(mxu_dtype), w2_ref[...],
                preferred_element_type=jnp.float32)                    # MXU
    o_ref[...] = (o + b2_ref[...]).astype(o_ref.dtype)


def init_params(key, input_dim, hidden_dim1, hidden_dim2, output_dim):
    """Logical params, pre-transposed to (in_features, out_features),
    mimicking nn.Linear's uniform(-1/sqrt(fan_in), +1/sqrt(fan_in)) init."""
    d_in = input_dim + 1  # the module does input = input_dim + 1
    k1, k2, k3, k4 = jax.random.split(key, 4)
    lim1 = 1.0 / jnp.sqrt(d_in)
    lim2 = 1.0 / jnp.sqrt(hidden_dim1)
    w1 = jax.random.uniform(k1, (d_in, hidden_dim1), jnp.float32, -lim1, lim1)
    b1 = jax.random.uniform(k2, (hidden_dim1,), jnp.float32, -lim1, lim1)
    w2 = jax.random.uniform(k3, (hidden_dim1, output_dim), jnp.float32, -lim2, lim2)
    b2 = jax.random.uniform(k4, (output_dim,), jnp.float32, -lim2, lim2)
    # fc3 (hidden_dim2 -> output_dim) is unused in forward; not materialized.
    return w1, b1, w2, b2


def prepare_params(w1, b1, w2, b2, *, mxu_dtype=jnp.float32):
    """One-time prep:
      * fold the t-row of w1 and b1 into an augmented fc1 weight
        (x_aug = [x, t, 1, 0...] supplies the matching K columns),
      * zero-pad H1 / O to multiples of 128 (lane-dense),
      * pre-cast weights to the MXU input dtype.
    Zero padding is exact: padded h columns are tanh(0)=0 and the matching
    w2 rows/cols are 0."""
    d_in, H1 = w1.shape
    D = d_in - 1
    O = w2.shape[1]
    H1p = _round_up(H1, 128)
    Op = _round_up(O, 128)
    Dp = _round_up(D + 2, 8)   # [x(D), t(1), ones(1), zero pad]

    w1a = jnp.zeros((Dp, H1p), jnp.float32)
    w1a = w1a.at[:D, :H1].set(w1[:D, :])          # x rows
    w1a = w1a.at[D, :H1].set(w1[D, :])            # t row
    w1a = w1a.at[D + 1, :H1].set(b1)              # bias row (hit by the ones column)
    w1a = w1a.astype(mxu_dtype)

    w2p = jnp.zeros((H1p, Op), jnp.float32).at[:H1, :O].set(w2).astype(mxu_dtype)
    b2p = jnp.zeros((1, Op), jnp.float32).at[:, :O].set(b2[None, :])
    return (w1a, w2p, b2p, int(D), int(H1), int(O))


def mlp_forward(x, t, params, *, max_block_rows=1024, mxu_dtype=jnp.float32,
                out_dtype=jnp.float32):
    """x: (B, input_dim), t: (B,).  Returns (B, output_dim) in out_dtype,
    matching torch: x = cat([x, t[:,None]], 1).float(); x = tanh(fc1(x)); fc2(x)."""
    w1a, w2p, b2p, D, H1, O = params
    Dp, H1p = w1a.shape
    Op = w2p.shape[1]

    x = x.astype(jnp.float32)
    t = t.astype(jnp.float32)
    B = x.shape[0]

    # --- Batch tiling: minimal padding, >=2 tiles for large B (v7x megacore).
    num_tiles = _cdiv(B, max_block_rows)
    if B > 512:
        num_tiles = max(num_tiles, 2)
    TB = _round_up(_cdiv(B, num_tiles), 8)
    B_pad = num_tiles * TB

    # --- Augmented input: [x, t, 1, 0...] (tiny: Dp*4 bytes/row).
    xa = jnp.zeros((B_pad, Dp), jnp.float32)
    xa = xa.at[:B, :D].set(x)
    xa = xa.at[:B, D].set(t)
    xa = xa.at[:B, D + 1].set(1.0)
    # Padded batch rows have a 0 in the "ones" column -> harmless; sliced off below.

    w_item = jnp.dtype(mxu_dtype).itemsize
    o_item = jnp.dtype(out_dtype).itemsize

    # --- Explicit VMEM budget (double-buffered tiles + resident weights + headroom).
    vmem_est = (2 * TB * Dp * 4                      # x tiles
                + 2 * (Dp * H1p + H1p * Op) * w_item  # weights (double-buffer allowance)
                + 2 * Op * 4                          # b2
                + 2 * TB * Op * o_item                # out tiles
                + TB * H1p * 4 + TB * Op * 4)         # h / acc intermediates
    vmem_limit = int(min(max(2 * vmem_est, 16 << 20), 96 << 20))

    flops = 2 * B_pad * (Dp * H1p + H1p * Op) + B_pad * Op
    bytes_accessed = (4 * B_pad * Dp
                      + w_item * (Dp * H1p + H1p * Op) + 4 * Op
                      + o_item * B_pad * Op)

    out = pl.pallas_call(
        functools.partial(_mlp_kernel, mxu_dtype=mxu_dtype),
        out_shape=jax.ShapeDtypeStruct((B_pad, Op), out_dtype),
        grid=(num_tiles,),
        in_specs=[
            pl.BlockSpec((TB, Dp), lambda i: (i, 0)),     # x_aug: tiled over batch
            pl.BlockSpec((Dp, H1p), lambda i: (0, 0)),    # fc1 weight: VMEM-resident
            pl.BlockSpec((H1p, Op), lambda i: (0, 0)),    # fc2 weight: VMEM-resident
            pl.BlockSpec((1, Op), lambda i: (0, 0)),      # b2
        ],
        out_specs=pl.BlockSpec((TB, Op), lambda i: (i, 0)),
        compiler_params=pltpu.CompilerParams(
            dimension_semantics=("parallel",),            # batch tiles independent
            vmem_limit_bytes=vmem_limit,
        ),
        cost_estimate=pl.CostEstimate(
            flops=flops,
            transcendentals=B_pad * H1p,                  # tanh
            bytes_accessed=bytes_accessed,
        ),
    )(xa, w1a, w2p, b2p)

    # Strip batch-row and lane padding.
    return out[:B, :O]


if __name__ == "__main__":
    key = jax.random.PRNGKey(0)
    kx, kt, kp = jax.random.split(key, 3)

    B = 8
    input_dim = 4
    hidden_dim1 = 32
    hidden_dim2 = 16  # defined in the module but unused by forward
    output_dim = 8

    x = jax.random.normal(kx, (B, input_dim), jnp.float32)
    t = jax.random.normal(kt, (B,), jnp.float32)

    w1, b1, w2, b2 = init_params(kp, input_dim, hidden_dim1, hidden_dim2, output_dim)

    # Default f32 MXU inputs -> meets 1e-5 tolerance.  On v5e, use
    # mxu_dtype=jnp.bfloat16 in both prepare_params and mlp_forward (and loosen
    # the tolerance) for the bf16-native MXU path.
    params = prepare_params(w1, b1, w2, b2, mxu_dtype=jnp.float32)

    out = mlp_forward(x, t, params, mxu_dtype=jnp.float32)
    out = jax.block_until_ready(out)

    # Pure-JAX reference (matches the PyTorch forward).
    xc = jnp.concatenate([x, t[:, None]], axis=1)
    ref = jnp.tanh(xc @ w1 + b1) @ w2 + b2
    assert out.shape == (B, output_dim)
    assert jnp.max(jnp.abs(out - ref)) < 1e-5

    print("KERNEL_OK")
</pallas_src>

<mosaic_0001>
module attributes {stable_mosaic.version = 11 : i64} {
  func.func @_mlp_kernel(%arg0: i32, %arg1: memref<8x8xf32, #tpu.memory_space<vmem>>, %arg2: memref<8x128xf32, #tpu.memory_space<vmem>>, %arg3: memref<128x128xf32, #tpu.memory_space<vmem>>, %arg4: memref<1x128xf32, #tpu.memory_space<vmem>>, %arg5: memref<8x128xf32, #tpu.memory_space<vmem>>) attributes {dimension_semantics = [#tpu.dimension_semantics<parallel>], iteration_bounds = array<i64: 1>, scalar_prefetch = 0 : i64, scratch_operands = 0 : i64, tpu.core_type = #tpu.core_type<tc>, window_params = [{transform_indices = @transform_0, window_bounds = array<i64: 8, 8>}, {pipeline_mode = #tpu.pipeline_mode<synchronous>, transform_indices = @transform_1, window_bounds = array<i64: 8, 128>}, {pipeline_mode = #tpu.pipeline_mode<synchronous>, transform_indices = @transform_2, window_bounds = array<i64: 128, 128>}, {pipeline_mode = #tpu.pipeline_mode<synchronous>, transform_indices = @transform_3, window_bounds = array<i64: 1, 128>}, {transform_indices = @transform_4, window_bounds = array<i64: 8, 128>}]} {
    %c0 = arith.constant 0 : index
    %c0_0 = arith.constant 0 : index
    %0 = vector.load %arg1[%c0, %c0_0] : memref<8x8xf32, #tpu.memory_space<vmem>>, vector<8x8xf32>
    %c0_1 = arith.constant 0 : index
    %c0_2 = arith.constant 0 : index
    %1 = vector.load %arg2[%c0_1, %c0_2] : memref<8x128xf32, #tpu.memory_space<vmem>>, vector<8x128xf32>
    %cst = arith.constant dense<0.000000e+00> : vector<8x128xf32>
    %2 = tpu.matmul %0, %1, %cst {dimension_numbers = #tpu.dot_dimension_numbers<[1], [0], [0], [1], [0, 0, 1, 1], [], []>} : vector<8x8xf32>, vector<8x128xf32>, vector<8x128xf32> -> vector<8x128xf32>
    %3 = math.tanh %2 : vector<8x128xf32>
    %c0_3 = arith.constant 0 : index
    %c0_4 = arith.constant 0 : index
    %4 = vector.load %arg3[%c0_3, %c0_4] : memref<128x128xf32, #tpu.memory_space<vmem>>, vector<128x128xf32>
    %cst_5 = arith.constant dense<0.000000e+00> : vector<8x128xf32>
    %5 = tpu.matmul %3, %4, %cst_5 {dimension_numbers = #tpu.dot_dimension_numbers<[1], [0], [0], [1], [0, 0, 1, 1], [], []>} : vector<8x128xf32>, vector<128x128xf32>, vector<8x128xf32> -> vector<8x128xf32>
    %c0_6 = arith.constant 0 : index
    %c0_7 = arith.constant 0 : index
    %6 = vector.load %arg4[%c0_6, %c0_7] : memref<1x128xf32, #tpu.memory_space<vmem>>, vector<1x128xf32>
    %7 = vector.broadcast %6 : vector<1x128xf32> to vector<8x128xf32>
    %8 = arith.addf %5, %7 : vector<8x128xf32>
    %c0_8 = arith.constant 0 : index
    %c0_9 = arith.constant 0 : index
    %9 = vector.load %arg5[%c0_8, %c0_9] : memref<8x128xf32, #tpu.memory_space<vmem>>, vector<8x128xf32>
    tpu.vector_store %arg5[%c0_8, %c0_9], %8 {strides = array<i32>} : memref<8x128xf32, #tpu.memory_space<vmem>>, vector<8x128xf32>,
    return
  }
  func.func @transform_0(%arg0: i32) -> (i32, i32) {
    %c0_i32 = arith.constant 0 : i32
    %c0_i32_0 = arith.constant 0 : i32
    return %arg0, %c0_i32 : i32, i32
  }
  func.func @transform_1(%arg0: i32) -> (i32, i32) {
    %c0_i32 = arith.constant 0 : i32
    %c0_i32_0 = arith.constant 0 : i32
    %c0_i32_1 = arith.constant 0 : i32
    return %c0_i32, %c0_i32_0 : i32, i32
  }
  func.func @transform_2(%arg0: i32) -> (i32, i32) {
    %c0_i32 = arith.constant 0 : i32
    %c0_i32_0 = arith.constant 0 : i32
    %c0_i32_1 = arith.constant 0 : i32
    return %c0_i32, %c0_i32_0 : i32, i32
  }
  func.func @transform_3(%arg0: i32) -> (i32, i32) {
    %c0_i32 = arith.constant 0 : i32
    %c0_i32_0 = arith.constant 0 : i32
    %c0_i32_1 = arith.constant 0 : i32
    return %c0_i32, %c0_i32_0 : i32, i32
  }
  func.func @transform_4(%arg0: i32) -> (i32, i32) {
    %c0_i32 = arith.constant 0 : i32
    %c0_i32_0 = arith.constant 0 : i32
    return %arg0, %c0_i32 : i32, i32
  }
}

</mosaic_0001>

<bundles_post_ra>
// kernel: tpu_custom_call.1
= control target key start
LH: loop header
LB: loop body
LE: loop exit
PB: predicated region body
PF: predicated region fallthrough
CT: control target
= control target key end

     0   :  { %9 = vsyncpa [#allocation3], 0  ;;  %s305_s0 = inlined_call_operand.hbm [shape: f32[8,8], index: 0, kind: input, shape index: {}]   ;;  %s306_s1 = inlined_call_operand.hbm [shape: f32[8,128], index: 1, kind: input, shape index: {}]   ;;  %s307_s2 = inlined_call_operand.hbm [shape: f32[128,128], index: 2, kind: input, shape index: {}]   ;;  %s308_s3 = inlined_call_operand.vmem [shape: f32[1,128], index: 3, kind: input, shape index: {}]   ;;  %s309_s4 = inlined_call_operand.hbm [shape: f32[8,128], index: 4, kind: output, shape index: {}]  }
   0x1   :  { %10 = vsyncpa [#allocation6], 0  ;;  %s28_s17 = sshll.u32 %s306_s1, 4  ;;  %s29_s17 = int_to_ptr.hbm [resolvable:$true] %s28_s17 }
   0x2   :  { %11 = vsyncpa [#allocation4], 0  ;;  %s259_s18 = smov [#allocation5]   ;;  %s17_s22 = sshll.u32 %s305_s0, 4  ;;  %s18_s22 = int_to_ptr.hbm [resolvable:$true] %s17_s22 }
   0x3   :  { %s30_s19 = sshll.u32 %s259_s18, 4  ;;  %s260_s23 = smov [#allocation2]   ;;  %s31_s19 = int_to_ptr.vmem [resolvable:$true] %s30_s19 }
   0x4   :  { %33 = dma.hbm_to_vmem [thread:$0]  %s29_s17, 128, %s31_s19, [#allocation6]  }
   0x5   :  { %s19_s24 = sshll.u32 %s260_s23, 4  ;;  %s38_s27 = sshll.u32 %s307_s2, 4  ;;  %s20_s24 = int_to_ptr.vmem [resolvable:$true] %s19_s24  ;;  %s39_s27 = int_to_ptr.hbm [resolvable:$true] %s38_s27 }
   0x6   :  { %22 = dma.hbm_to_vmem [thread:$0]  %s18_s22, 128, %s20_s24, [#allocation3]  }
   0x7   :  { %s261_s1 = smov [#allocation7]   ;;  %s262_s29 = smov 128  }
   0x8   :  { %s40_s28 = sshll.u32 %s261_s1, 4  ;;  %s263_s30 = smov 8   ;;  %s41_s28 = int_to_ptr.vmem [resolvable:$true] %s40_s28 }
   0x9   :  { %46 = dma.hbm_to_vmem [thread:$0]  %s39_s27, 2048, %s41_s28, [#allocation6], %s262_s29, %s262_s29, %s263_s30  }
   0xa   :  { %253 = dma.done.wait [#allocation3], 128  }
   0xb   :  { %254 = vsyncadd [#allocation3], 4294967168 }
   0xc   :  { %255 = dma.done.wait [#allocation6], 2176  }
   0xd   :  { %256 = vsyncadd [#allocation6], 4294965120  ;;  %vm63_vm0 = vcmask 64512   ;;  %v62_v0 = vld [vmem:[#allocation5] sm:$0xff]  ;;  %v61_v1 = vld [vmem:[#allocation2] sm:$0xff]  ;;  %s264_s5 = smov [#allocation8]  }
   0xe   :  { %v103_v2 = vld [vmem:[#allocation7 + $0x78] sm:$0xff]  ;;  %82 = vmatpush.msra.mxu0 %v62_v0  ;;  %v102_v3 = vld [vmem:[#allocation7 + $0x70] sm:$0xff]  ;;  %v101_v4 = vld [vmem:[#allocation7 + $0x68] sm:$0xff]  ;;  %s134_s6 = sshll.u32 %s264_s5, 4  ;;  %s136_s9 = sshll.u32 %s309_s4, 4  ;;  %s135_s6 = int_to_ptr.vmem [resolvable:$true] %s134_s6  ;;  %s137_s9 = int_to_ptr.hbm [resolvable:$true] %s136_s9 }
   0xf   :  { %108 = vmatpush.msra.mxu1 %v103_v2  ;;  %147 = vmatmul.msk.f32.vlgmr.msra.gmra.mxu0 %vm63_vm0, %v61_v1  ;;  %v100_v5 = vld [vmem:[#allocation7 + $0x60] sm:$0xff]  ;;  %v99_v6 = vld [vmem:[#allocation7 + $0x58] sm:$0xff]  ;;  %v98_v7 = vld [vmem:[#allocation7 + $0x50] sm:$0xff] }
  0x10   :  { %v97_v8 = vld [vmem:[#allocation7 + $0x48] sm:$0xff]  ;;  %v96_v9 = vld [vmem:[#allocation7 + $0x40] sm:$0xff]  ;;  %v95_v10 = vld [vmem:[#allocation7 + $0x38] sm:$0xff] }
  0x11   :  { %109 = vmatpush.msra.mxu1 %v102_v3  ;;  %v94_v11 = vld [vmem:[#allocation7 + $0x30] sm:$0xff]  ;;  %v93_v12 = vld [vmem:[#allocation7 + $0x28] sm:$0xff]  ;;  %v92_v13 = vld [vmem:[#allocation7 + $0x20] sm:$0xff] }
  0x12   :  { %v91_v14 = vld [vmem:[#allocation7 + $0x18] sm:$0xff]  ;;  %v90_v15 = vld [vmem:[#allocation7 + $0x10] sm:$0xff]  ;;  %v89_v16 = vld [vmem:[#allocation7 + $0x8] sm:$0xff] }
  0x13   :  { %110 = vmatpush.msra.mxu1 %v101_v4  ;;  %v88_v17 = vld [vmem:[#allocation7] sm:$0xff]  ;;  %v154_v20 = vld [vmem:[%s308_s3] ss:$0 sm:$0xff] }
  0x15   :  { %111 = vmatpush.msra.mxu1 %v100_v5 }
  0x17   :  { %112 = vmatpush.msra.mxu1 %v99_v6 }
  0x19   :  { %113 = vmatpush.msra.mxu1 %v98_v7 }
  0x1b   :  { %114 = vmatpush.msra.mxu1 %v97_v8 }
  0x1d   :  { %115 = vmatpush.msra.mxu1 %v96_v9 }
  0x1f   :  { %116 = vmatpush.msra.mxu1 %v95_v10 }
  0x21   :  { %117 = vmatpush.msra.mxu1 %v94_v11 }
  0x23   :  { %118 = vmatpush.msra.mxu1 %v93_v12 }
  0x25   :  { %119 = vmatpush.msra.mxu1 %v92_v13 }
  0x27   :  { %120 = vmatpush.msra.mxu1 %v91_v14 }
  0x29   :  { %121 = vmatpush.msra.mxu1 %v90_v15 }
  0x2b   :  { %122 = vmatpush.msra.mxu1 %v89_v16 }
  0x2d   :  { %123 = vmatpush.msra.mxu1 %v88_v17 }
  0x8c   :  { %v84_v18 = vpop.f32.mrf.mxu0 }
  0x8d   :  { %155 = vtanh.f32 %v84_v18 }
  0x93   :  { %v156_v19 = vpop.eup %155 }
  0x94   :  { %124 = vmatmul.f32.vlgmr.msra.gmra.mxu1 %v156_v19 }
 0x111   :  { %v125_v21 = vpop.f32.mrf.mxu1 }
 0x112   :  { %v126_v22 = vadd.f32 %v154_v20, %v125_v21 }
 0x114   :  { %128 = vst [vmem:[#allocation8] sm:$0xff] %v126_v22 }
 0x115   :  { %139 = dma.vmem_to_hbm [thread:$0]  %s135_s6, 128, %s137_s9, [#allocation4]  }
 0x116   :  { %257 = dma.done.wait [#allocation4], 128  }
 0x117   :  { %258 = vsyncadd [#allocation4], 4294967168 }
 0x118   :  { %144 = vsyncpa [#allocation3], 1 }
 0x119   :  { %145 = vsyncpa [#allocation6], 1 }
 0x11a   :  { %146 = vsyncpa [#allocation4], 1 }

</bundles_post_ra>
